<compile_context>
chip_gen: v5e
topology: v5e:2x2
jax: 0.10.0
libtpu: 0.0.40
codegen_flags: <defaults>
</compile_context>

<pallas_src>
import jax
import jax.numpy as jnp
from jax.experimental import pallas as pl
from jax.experimental.pallas import tpu as pltpu


def bayesian_encoder_kernel(
    # VMEM inputs
    tgt_ids_ref,   # (tile_b, 1)         int32
    ctx_ids_ref,   # (tile_b*n_ctx, 1)   int32, position-major rows (j*tile_b + b)
    embwt_ref,     # (V, 2E)   Emb @ Wt   (resident)
    embwc_ref,     # (V, 2E)   Emb @ Wc   (resident)
    mb_ref,        # (1, 2E)   m bias (f32)
    w12_ref,       # (2E, 2E)  [W1^T | W2^T]
    b12_ref,       # (1, 2E)   [b1 | b2] (f32)
    # VMEM output
    out_ref,       # (tile_b, 2E)  [mu | softplus]
):
    tile_b = tgt_ids_ref.shape[0]
    m_rows = ctx_ids_ref.shape[0]
    n_ctx = m_rows // tile_b
    v, two_e = embwc_ref.shape
    e = two_e // 2
    pdtype = embwc_ref.dtype

    # ---- vectorized gather fused into the projection (one-hot on the MXU) ----
    # one_hot(id) @ (Emb @ W) == Emb[id] @ W ; out-of-range ids -> zero row.
    tgt_oh = (jax.lax.broadcasted_iota(jnp.int32, (tile_b, v), 1)
              == tgt_ids_ref[...]).astype(pdtype)                      # (tile_b, V)
    ctx_oh = (jax.lax.broadcasted_iota(jnp.int32, (m_rows, v), 1)
              == ctx_ids_ref[...]).astype(pdtype)                      # (tile_b*n_ctx, V)

    # proj(b, j) = t_emb(b) @ Wt + c_emb(b, j) @ Wc + m_b ; bias/target hoisted.
    tgt_proj = jnp.dot(tgt_oh, embwt_ref[...],
                       preferred_element_type=jnp.float32) + mb_ref[...]   # (tile_b, 2E)
    ctx_proj = jnp.dot(ctx_oh, embwc_ref[...],
                       preferred_element_type=jnp.float32)                 # (tile_b*n_ctx, 2E)

    # ReLU per context position, sum over positions.  Rows are position-major,
    # so this is a leading-axis reduction (n_ctx slab adds, no XLU work).
    relu_all = jnp.maximum(
        ctx_proj.reshape(n_ctx, tile_b, two_e) + tgt_proj[None, :, :], 0.0)
    acc = jnp.sum(relu_all, axis=0)                                        # (tile_b, 2E)

    # ---- fused heads: z = acc @ [W1^T | W2^T] + [b1 | b2] ----
    w12 = w12_ref[...]
    if w12.dtype != acc.dtype:
        w12 = w12.astype(acc.dtype)
    z = jnp.dot(acc, w12, preferred_element_type=jnp.float32) + b12_ref[...]

    # Single lane-dense output: [:, :E] = mu, [:, E:] = softplus(z[:, E:]).
    lane = jax.lax.broadcasted_iota(jnp.int32, z.shape, 1)
    softplus_z = jnp.maximum(z, 0.0) + jnp.log1p(jnp.exp(-jnp.abs(z)))
    out_ref[...] = jnp.where(lane < e, z, softplus_z).astype(out_ref.dtype)


def _pick_tile_b(batch):
    """Largest 8-aligned divisor of `batch` (<= 256), preferring >= 2 grid
    steps so both v7x TensorCores get work; falls back to the full batch."""
    if batch % 8 != 0:
        return batch
    divisors = [t for t in range(8, min(batch, 256) + 1, 8) if batch % t == 0]
    two_step = [t for t in divisors if batch // t >= 2]
    return (two_step or divisors)[-1]


def bayesian_encoder(
    target, contexts, emb, m_w, m_b, fc1_w, fc1_b, fc2_w, fc2_b,
    *, tile_b=None, param_dtype=jnp.float32,
):
    """BayesianEncoder.forward.

    target:   (B,) or (B, 1) int token ids
    contexts: (B, 2*window) int token ids
    emb:      (V, E)
    m_w:      (2E, 2E) PyTorch layout (out, in);  m_b: (2E,)
    fc1_w:    (E, 2E);  fc1_b: (E,)
    fc2_w:    (E, 2E);  fc2_b: (E,)
    returns (mu, sigma), each (B, E) float32.
    """
    target_idx = jnp.asarray(target).reshape(-1).astype(jnp.int32)
    context_idx = jnp.asarray(contexts).astype(jnp.int32)
    B = target_idx.shape[0]
    n_ctx = context_idx.shape[1]
    V, E = emb.shape
    two_e = 2 * E

    if tile_b is None:
        tile_b = _pick_tile_b(B)
    assert B % tile_b == 0, "batch must be a multiple of tile_b"
    assert tile_b == B or tile_b % 8 == 0, "tile_b must be 8-aligned (or == B)"
    n_tiles = B // tile_b

    # ---- host-side re-layout / algebraic fusion (once, not per grid step) ----
    hp = jax.lax.Precision.HIGHEST
    emb_f = jnp.asarray(emb, jnp.float32)
    m_wt = jnp.asarray(m_w, jnp.float32).T                  # (2E_in, 2E_out)
    # split concat-matmul: cat([t, c]) @ M^T == t @ Wt + c @ Wc, and fuse the
    # gather into the projection: one_hot(id) @ (Emb @ W) == Emb[id] @ W.
    embwt = jnp.dot(emb_f, m_wt[:E, :], precision=hp).astype(param_dtype)  # (V, 2E)
    embwc = jnp.dot(emb_f, m_wt[E:, :], precision=hp).astype(param_dtype)  # (V, 2E)
    mb = jnp.asarray(m_b, jnp.float32).reshape(1, two_e)
    # fused heads: one (2E, 2E) weight / (1, 2E) bias, split mu|sigma after.
    w12 = jnp.concatenate([jnp.asarray(fc1_w, jnp.float32).T,
                           jnp.asarray(fc2_w, jnp.float32).T],
                          axis=1).astype(param_dtype)                      # (2E, 2E)
    b12 = jnp.concatenate([jnp.asarray(fc1_b, jnp.float32),
                           jnp.asarray(fc2_b, jnp.float32)]).reshape(1, two_e)

    # ids as lane-1 int32 columns; context ids position-major per batch tile
    # (row = j*tile_b + b) so the in-kernel reduction is leading-axis.
    tgt_ids = target_idx.reshape(B, 1)
    ctx_ids = (context_idx.reshape(n_tiles, tile_b, n_ctx)
               .transpose(0, 2, 1).reshape(B * n_ctx, 1))

    # VMEM budget (resident tables + double-buffered ids/output + temporaries);
    # only raise the scoped limit when the defaults wouldn't fit.
    pbytes = jnp.dtype(param_dtype).itemsize
    resident = (embwt.size + embwc.size + w12.size) * pbytes + (mb.size + b12.size) * 4
    io = 2 * ((tile_b + tile_b * n_ctx) * 4 + tile_b * two_e * 4)
    work = 3 * (tile_b * (n_ctx + 1) * V + tile_b * (n_ctx + 3) * two_e) * 4
    vmem_est = int(resident + io + work + (1 << 20))
    cparams = dict(dimension_semantics=("parallel",))
    if vmem_est > (32 << 20):
        cparams["vmem_limit_bytes"] = vmem_est

    const = lambda i: (0, 0)
    tiled = lambda i: (i, 0)

    out = pl.pallas_call(
        bayesian_encoder_kernel,
        out_shape=jax.ShapeDtypeStruct((B, two_e), jnp.float32),
        grid_spec=pltpu.PrefetchScalarGridSpec(
            num_scalar_prefetch=0,
            grid=(n_tiles,),
            in_specs=[
                pl.BlockSpec((tile_b, 1), tiled),            # target ids
                pl.BlockSpec((tile_b * n_ctx, 1), tiled),    # context ids (pos-major)
                pl.BlockSpec((V, two_e), const),             # Emb @ Wt (resident)
                pl.BlockSpec((V, two_e), const),             # Emb @ Wc (resident)
                pl.BlockSpec((1, two_e), const),             # m bias
                pl.BlockSpec((two_e, two_e), const),         # [W1^T | W2^T]
                pl.BlockSpec((1, two_e), const),             # [b1 | b2]
            ],
            out_specs=pl.BlockSpec((tile_b, two_e), tiled),  # [mu | sigma]
        ),
        compiler_params=pltpu.CompilerParams(**cparams),
    )(tgt_ids, ctx_ids, embwt, embwc, mb, w12, b12)

    return out[:, :E], out[:, E:]


if __name__ == "__main__":
    # Small shapes consistent with the module's forward.
    vocab_size, embed_size, window = 64, 32, 4
    batch = 16                      # tile_b=8 -> 2 grid steps (both v7x TCs busy)
    n_ctx = 2 * window

    key = jax.random.PRNGKey(0)
    (k_emb, k_m, k_mb, k_1, k_1b, k_2, k_2b, k_t, k_c) = jax.random.split(key, 9)

    emb = jax.random.normal(k_emb, (vocab_size, embed_size), dtype=jnp.float32)
    bnd = 1.0 / (2 * embed_size) ** 0.5   # nn.Linear-style init, fan_in = 2E
    m_w = jax.random.uniform(k_m, (2 * embed_size, 2 * embed_size),
                             minval=-bnd, maxval=bnd, dtype=jnp.float32)
    m_b = jax.random.uniform(k_mb, (2 * embed_size,),
                             minval=-bnd, maxval=bnd, dtype=jnp.float32)
    fc1_w = jax.random.uniform(k_1, (embed_size, 2 * embed_size),
                               minval=-bnd, maxval=bnd, dtype=jnp.float32)
    fc1_b = jax.random.uniform(k_1b, (embed_size,),
                               minval=-bnd, maxval=bnd, dtype=jnp.float32)
    fc2_w = jax.random.uniform(k_2, (embed_size, 2 * embed_size),
                               minval=-bnd, maxval=bnd, dtype=jnp.float32)
    fc2_b = jax.random.uniform(k_2b, (embed_size,),
                               minval=-bnd, maxval=bnd, dtype=jnp.float32)

    target = jax.random.randint(k_t, (batch,), 0, vocab_size, dtype=jnp.int32)
    contexts = jax.random.randint(k_c, (batch, n_ctx), 0, vocab_size,
                                  dtype=jnp.int32)

    mu, sigma = bayesian_encoder(
        target, contexts, emb, m_w, m_b, fc1_w, fc1_b, fc2_w, fc2_b, tile_b=8
    )
    mu, sigma = jax.block_until_ready((mu, sigma))

    # ---- plain-JAX reference (HIGHEST precision matmuls) ----
    hp = jax.lax.Precision.HIGHEST
    t_emb = jnp.take(emb, target, axis=0)                        # (B, E)
    c_emb = jnp.take(emb, contexts.reshape(-1), axis=0).reshape(
        batch, n_ctx, embed_size)                                 # (B, 2W, E)
    cat = jnp.concatenate(
        [jnp.broadcast_to(t_emb[:, None, :], c_emb.shape), c_emb], axis=-1)
    proj = jnp.einsum("bnk,ok->bno", cat, m_w, precision=hp) + m_b
    s_emb = jnp.maximum(proj, 0.0).sum(axis=1)
    mu_ref = jnp.dot(s_emb, fc1_w.T, precision=hp) + fc1_b
    sigma_ref = jax.nn.softplus(jnp.dot(s_emb, fc2_w.T, precision=hp) + fc2_b)

    assert mu.shape == (batch, embed_size)
    assert sigma.shape == (batch, embed_size)
    # Tightened vs. the previous version: the gather is now an exact one-hot
    # row selection, so residual error is only MXU f32 accumulation.
    assert jnp.allclose(mu, mu_ref, rtol=5e-3, atol=5e-3)
    assert jnp.allclose(sigma, sigma_ref, rtol=5e-3, atol=5e-3)
    assert bool(jnp.all(sigma > 0.0))

    print("KERNEL_OK")
</pallas_src>

<mosaic_0001>
module attributes {stable_mosaic.version = 11 : i64} {
  func.func @bayesian_encoder_kernel(%arg0: i32, %arg1: memref<8x1xi32, #tpu.memory_space<vmem>>, %arg2: memref<64x1xi32, #tpu.memory_space<vmem>>, %arg3: memref<64x64xf32, #tpu.memory_space<vmem>>, %arg4: memref<64x64xf32, #tpu.memory_space<vmem>>, %arg5: memref<1x64xf32, #tpu.memory_space<vmem>>, %arg6: memref<64x64xf32, #tpu.memory_space<vmem>>, %arg7: memref<1x64xf32, #tpu.memory_space<vmem>>, %arg8: memref<8x64xf32, #tpu.memory_space<vmem>>) attributes {dimension_semantics = [#tpu.dimension_semantics<parallel>], iteration_bounds = array<i64: 2>, scalar_prefetch = 0 : i64, scratch_operands = 0 : i64, tpu.core_type = #tpu.core_type<tc>, window_params = [{transform_indices = @transform_0, window_bounds = array<i64: 8, 1>}, {transform_indices = @transform_1, window_bounds = array<i64: 64, 1>}, {pipeline_mode = #tpu.pipeline_mode<synchronous>, transform_indices = @transform_2, window_bounds = array<i64: 64, 64>}, {pipeline_mode = #tpu.pipeline_mode<synchronous>, transform_indices = @transform_3, window_bounds = array<i64: 64, 64>}, {pipeline_mode = #tpu.pipeline_mode<synchronous>, transform_indices = @transform_4, window_bounds = array<i64: 1, 64>}, {pipeline_mode = #tpu.pipeline_mode<synchronous>, transform_indices = @transform_5, window_bounds = array<i64: 64, 64>}, {pipeline_mode = #tpu.pipeline_mode<synchronous>, transform_indices = @transform_6, window_bounds = array<i64: 1, 64>}, {transform_indices = @transform_7, window_bounds = array<i64: 8, 64>}]} {
    %0 = tpu.iota {dimensions = array<i32: 1>} : vector<8x64xi32>
    %c0 = arith.constant 0 : index
    %c0_0 = arith.constant 0 : index
    %1 = vector.load %arg1[%c0, %c0_0] : memref<8x1xi32, #tpu.memory_space<vmem>>, vector<8x1xi32>
    %2 = vector.broadcast %1 : vector<8x1xi32> to vector<8x64xi32>
    %3 = arith.cmpi eq, %0, %2 : vector<8x64xi32>
    %4 = arith.extui %3 : vector<8x64xi1> to vector<8x64xi32>
    %5 = arith.sitofp %4 : vector<8x64xi32> to vector<8x64xf32>
    %6 = tpu.iota {dimensions = array<i32: 1>} : vector<64x64xi32>
    %c0_1 = arith.constant 0 : index
    %c0_2 = arith.constant 0 : index
    %7 = vector.load %arg2[%c0_1, %c0_2] : memref<64x1xi32, #tpu.memory_space<vmem>>, vector<64x1xi32>
    %8 = vector.broadcast %7 : vector<64x1xi32> to vector<64x64xi32>
    %9 = arith.cmpi eq, %6, %8 : vector<64x64xi32>
    %10 = arith.extui %9 : vector<64x64xi1> to vector<64x64xi32>
    %11 = arith.sitofp %10 : vector<64x64xi32> to vector<64x64xf32>
    %c0_3 = arith.constant 0 : index
    %c0_4 = arith.constant 0 : index
    %12 = vector.load %arg3[%c0_3, %c0_4] : memref<64x64xf32, #tpu.memory_space<vmem>>, vector<64x64xf32>
    %cst = arith.constant dense<0.000000e+00> : vector<8x64xf32>
    %13 = tpu.matmul %5, %12, %cst {dimension_numbers = #tpu.dot_dimension_numbers<[1], [0], [0], [1], [0, 0, 1, 1], [], []>} : vector<8x64xf32>, vector<64x64xf32>, vector<8x64xf32> -> vector<8x64xf32>
    %c0_5 = arith.constant 0 : index
    %c0_6 = arith.constant 0 : index
    %14 = vector.load %arg5[%c0_5, %c0_6] : memref<1x64xf32, #tpu.memory_space<vmem>>, vector<1x64xf32>
    %15 = vector.broadcast %14 : vector<1x64xf32> to vector<8x64xf32>
    %16 = arith.addf %13, %15 : vector<8x64xf32>
    %c0_7 = arith.constant 0 : index
    %c0_8 = arith.constant 0 : index
    %17 = vector.load %arg4[%c0_7, %c0_8] : memref<64x64xf32, #tpu.memory_space<vmem>>, vector<64x64xf32>
    %cst_9 = arith.constant dense<0.000000e+00> : vector<64x64xf32>
    %18 = tpu.matmul %11, %17, %cst_9 {dimension_numbers = #tpu.dot_dimension_numbers<[1], [0], [0], [1], [0, 0, 1, 1], [], []>} : vector<64x64xf32>, vector<64x64xf32>, vector<64x64xf32> -> vector<64x64xf32>
    %19 = vector.shape_cast %18 : vector<64x64xf32> to vector<8x8x64xf32>
    %20 = vector.shape_cast %16 : vector<8x64xf32> to vector<1x8x64xf32>
    %21 = vector.broadcast %20 : vector<1x8x64xf32> to vector<8x8x64xf32>
    %22 = arith.addf %19, %21 : vector<8x8x64xf32>
    %cst_10 = arith.constant 0.000000e+00 : f32
    %23 = vector.broadcast %cst_10 : f32 to vector<8x8x64xf32>
    %24 = arith.maximumf %22, %23 : vector<8x8x64xf32>
    %cst_11 = arith.constant dense<0.000000e+00> : vector<8x64xf32>
    %25 = vector.multi_reduction <add>, %24, %cst_11 [0] : vector<8x8x64xf32> to vector<8x64xf32>
    %c0_12 = arith.constant 0 : index
    %c0_13 = arith.constant 0 : index
    %26 = vector.load %arg6[%c0_12, %c0_13] : memref<64x64xf32, #tpu.memory_space<vmem>>, vector<64x64xf32>
    %cst_14 = arith.constant dense<0.000000e+00> : vector<8x64xf32>
    %27 = tpu.matmul %25, %26, %cst_14 {dimension_numbers = #tpu.dot_dimension_numbers<[1], [0], [0], [1], [0, 0, 1, 1], [], []>} : vector<8x64xf32>, vector<64x64xf32>, vector<8x64xf32> -> vector<8x64xf32>
    %c0_15 = arith.constant 0 : index
    %c0_16 = arith.constant 0 : index
    %28 = vector.load %arg7[%c0_15, %c0_16] : memref<1x64xf32, #tpu.memory_space<vmem>>, vector<1x64xf32>
    %29 = vector.broadcast %28 : vector<1x64xf32> to vector<8x64xf32>
    %30 = arith.addf %27, %29 : vector<8x64xf32>
    %31 = tpu.iota {dimensions = array<i32: 1>} : vector<8x64xi32>
    %cst_17 = arith.constant 0.000000e+00 : f32
    %32 = vector.broadcast %cst_17 : f32 to vector<8x64xf32>
    %33 = arith.maximumf %30, %32 : vector<8x64xf32>
    %34 = math.absf %30 : vector<8x64xf32>
    %cst_18 = arith.constant 0.000000e+00 : f32
    %35 = vector.broadcast %cst_18 : f32 to vector<8x64xf32>
    %36 = arith.subf %35, %34 : vector<8x64xf32>
    %37 = math.exp %36 : vector<8x64xf32>
    %38 = math.log1p %37 : vector<8x64xf32>
    %39 = arith.addf %33, %38 : vector<8x64xf32>
    %c32_i32 = arith.constant 32 : i32
    %40 = vector.broadcast %c32_i32 : i32 to vector<8x64xi32>
    %41 = arith.cmpi slt, %31, %40 : vector<8x64xi32>
    %42 = arith.select %41, %30, %39 : vector<8x64xi1>, vector<8x64xf32>
    %c0_19 = arith.constant 0 : index
    %c0_20 = arith.constant 0 : index
    %43 = vector.load %arg8[%c0_19, %c0_20] : memref<8x64xf32, #tpu.memory_space<vmem>>, vector<8x64xf32>
    tpu.vector_store %arg8[%c0_19, %c0_20], %42 {strides = array<i32>} : memref<8x64xf32, #tpu.memory_space<vmem>>, vector<8x64xf32>,
    return
  }
  func.func @transform_0(%arg0: i32) -> (i32, i32) {
    %c0_i32 = arith.constant 0 : i32
    %c0_i32_0 = arith.constant 0 : i32
    return %arg0, %c0_i32 : i32, i32
  }
  func.func @transform_1(%arg0: i32) -> (i32, i32) {
    %c0_i32 = arith.constant 0 : i32
    %c0_i32_0 = arith.constant 0 : i32
    return %arg0, %c0_i32 : i32, i32
  }
  func.func @transform_2(%arg0: i32) -> (i32, i32) {
    %c0_i32 = arith.constant 0 : i32
    %c0_i32_0 = arith.constant 0 : i32
    %c0_i32_1 = arith.constant 0 : i32
    return %c0_i32, %c0_i32_0 : i32, i32
  }
  func.func @transform_3(%arg0: i32) -> (i32, i32) {
    %c0_i32 = arith.constant 0 : i32
    %c0_i32_0 = arith.constant 0 : i32
    %c0_i32_1 = arith.constant 0 : i32
    return %c0_i32, %c0_i32_0 : i32, i32
  }
  func.func @transform_4(%arg0: i32) -> (i32, i32) {
    %c0_i32 = arith.constant 0 : i32
    %c0_i32_0 = arith.constant 0 : i32
    %c0_i32_1 = arith.constant 0 : i32
    return %c0_i32, %c0_i32_0 : i32, i32
  }
  func.func @transform_5(%arg0: i32) -> (i32, i32) {
    %c0_i32 = arith.constant 0 : i32
    %c0_i32_0 = arith.constant 0 : i32
    %c0_i32_1 = arith.constant 0 : i32
    return %c0_i32, %c0_i32_0 : i32, i32
  }
  func.func @transform_6(%arg0: i32) -> (i32, i32) {
    %c0_i32 = arith.constant 0 : i32
    %c0_i32_0 = arith.constant 0 : i32
    %c0_i32_1 = arith.constant 0 : i32
    return %c0_i32, %c0_i32_0 : i32, i32
  }
  func.func @transform_7(%arg0: i32) -> (i32, i32) {
    %c0_i32 = arith.constant 0 : i32
    %c0_i32_0 = arith.constant 0 : i32
    return %arg0, %c0_i32 : i32, i32
  }
}

</mosaic_0001>

<bundles_post_ra>
// kernel: tpu_custom_call.1
= control target key start
LH: loop header
LB: loop body
LE: loop exit
PB: predicated region body
PF: predicated region fallthrough
CT: control target
= control target key end

     0   :  { %12 = vsyncpa [#allocation3], 0  ;;  %s1123_s0 = inlined_call_operand.vmem [shape: s32[16,1], index: 0, kind: input, shape index: {}]   ;;  %s1124_s1 = inlined_call_operand.vmem [shape: s32[128,1], index: 1, kind: input, shape index: {}]   ;;  %s1125_s2 = inlined_call_operand.vmem [shape: f32[64,64], index: 2, kind: input, shape index: {}]   ;;  %s1126_s3 = inlined_call_operand.vmem [shape: f32[64,64], index: 3, kind: input, shape index: {}]   ;;  %s1127_s4 = inlined_call_operand.vmem [shape: f32[1,64], index: 4, kind: input, shape index: {}]   ;;  %s1128_s5 = inlined_call_operand.hbm [shape: f32[64,64], index: 5, kind: input, shape index: {}]   ;;  %s1129_s6 = inlined_call_operand.vmem [shape: f32[1,64], index: 6, kind: input, shape index: {}]   ;;  %s1130_s7 = inlined_call_operand.hbm [shape: f32[16,64], index: 7, kind: output, shape index: {}]  }
   0x1   :  { %13 = vsyncpa [#allocation4], 0 }
   0x2   :  { %15 = vsyncpa [#allocation4 + $0x1], 0  ;;  %s925_s24 = smov 0   ;;  %s927_s25 = smov 0  }
   0x3   :  { %s929_s26 = smov 0   ;;  %s931_s27 = smov 0  }
   0x4 LB: > { %s946_s28 = sadd.s32 4294967295, %s878_s27   ;;  %s670_s29 = sadd.s32 4294967294, %s878_s27   ;;  %s878_s27 = sphi %s931_s27, %s1136_s27   ;;  %s874_s26 = sphi %s929_s26, %s1135_s26   ;;  %s870_s25 = sphi %s927_s25, %s1134_s25   ;;  %s866_s24 = sphi %s925_s24, %s1133_s24  }
   0x5   : > { %s950_s30 = sadd.s32 1, %s878_s27   ;;  %s185_s8 = sadd.s32 1, %s874_s26 }
   0x6   : > { %s182_s9 = ssub.s32 %s878_s27, %s950_s30  ;;  %p195_p0 = scmp.ne.s32.totalorder %s874_s26, %s870_s25 }
   0x7   : > { %p183_p1 = scmp.eq.s32.totalorder %s182_s9, 0  ;;  %p196_p2 = scmp.eq.s32.totalorder %s946_s28, 1 }
   0x8   : > { %p201_p3 = scmp.ne.s32.totalorder %s870_s25, %s866_s24  ;;  %p202_p4 = scmp.eq.s32.totalorder %s670_s29, 1 }
   0x9   : > { %s961_s10 = scalar_select %p183_p1, %s874_s26, %s185_s8  }
   0xa   : > { %p963_p5 = por %p196_p2, %p195_p0  ;;  %p967_p6 = por %p202_p4, %p201_p3 }
   0xb   : > { %p671_p7 = scmp.ge.s32.totalorder %s878_s27, 1  ;;  %p209_p8 = scmp.lt.s32.totalorder %s878_s27, 3 }
   0xc   : > { %p733_p9 = scmp.eq.s32.totalorder %s946_s28, 0  ;;  %s229_s15 = sshll.u32 %s1128_s5, 4  ;;  %s230_s15 = int_to_ptr.hbm [resolvable:$true] %s229_s15 }
   0xd   : > { %p210_p10 = pnand %p671_p7, %p209_p8  ;;  %s880_s16 = smov [#allocation2]  }
   0xe   : > { %s231_s17 = sshll.u32 %s880_s16, 4  ;;  %s881_s18 = smov 128   ;;  %s232_s17 = int_to_ptr.vmem [resolvable:$true] %s231_s17 }
   0xf   : > { %p725_p11 = pneg %p210_p10  ;;  %s882_s19 = smov 8  }
  0x10   : > { %266 = sbr.rel (%p210_p10) target bundleno = 476 (0x1dc), region = 48 }
  0x11   : > { %p726_p12 = pnand %p733_p9, %p725_p11 }
  0x13   : > { %728 = dma.hbm_to_vmem [thread:$0]  (!%p726_p12), %s230_s15, 1024, %s232_s17, [#allocation3], %s881_s18, %s881_s18, %s882_s19  }
  0x15   : > { %857 = dma.done.wait (%p733_p9), [#allocation3], 1024  }
  0x16   : > { %859 = vsyncadd (%p733_p9), [#allocation3], 4294966272  ;;  %s984_s20 = sshll.u32 %s946_s28, 3  ;;  %p303_p13 = scmp.lt.s32.totalorder %s946_s28, 1  ;;  %v883_v0 = vmov 0   ;;  %v385_v4 = vld [vmem:[%s1125_s2 + $0x38] sm:$0xff]  ;;  %v313_v26 = vlaneseq }
  0x17   : > { %774 = vset.pattern.permute.xlu1 %v883_v0  ;;  %773 = vset.pattern.permute.xlu0 %v883_v0  ;;  %p308_p0 = scmp.lt.s32.totalorder %s984_s20, 15  ;;  %v421_v5 = vld [vmem:[%s1126_s3 + $0x38] sm:$0xff]  ;;  %v384_v6 = vld [vmem:[%s1125_s2 + $0x30] sm:$0xff]  ;;  %v383_v8 = vld [vmem:[%s1125_s2 + $0x28] sm:$0xff]  ;;  %vm390_vm0 = vcmask 523264   ;;  %v884_v31 = vmov 0.0   ;;  %s582_s14 = scalar_lea.hbm %s1130_s7, %s984_s20 }
  0x18   : > { %s1138_s28 = smov (!%p303_p13, %s946_s28), 1  ;;  %775 = vset.pattern.permute.xlu2 %v883_v0  ;;  %402 = vmatpush.msra.mxu2 %v385_v4  ;;  %v420_v7 = vld [vmem:[%s1126_s3 + $0x30] sm:$0xff]  ;;  %v419_v9 = vld [vmem:[%s1126_s3 + $0x28] sm:$0xff]  ;;  %v382_v16 = vld [vmem:[%s1125_s2 + $0x20] sm:$0xff]  ;;  %v1054_v27 = vand.u32 127, %v313_v26  ;;  %s300_s29 = sand.u32 1, %s870_s25  }
  0x19   : > { %s309_s21 = scalar_select %p308_p0, %s984_s20, 15  ;;  %703 = vmatpush.msra.mxu1 %v421_v5  ;;  %454 = vmatpush.msra.mxu0 %v421_v5  ;;  %v418_v17 = vld [vmem:[%s1126_s3 + $0x20] sm:$0xff]  ;;  %v381_v18 = vld [vmem:[%s1125_s2 + $0x18] sm:$0xff]  ;;  %v380_v20 = vld [vmem:[%s1125_s2 + $0x10] sm:$0xff] }
  0x1a   : > { %s677_s22 = sshll.u32 %s1138_s28, 3  ;;  %704 = vmatpush.msra.mxu3 %v421_v5  ;;  %403 = vmatpush.msra.mxu2 %v384_v6  ;;  %v417_v19 = vld [vmem:[%s1126_s3 + $0x18] sm:$0xff]  ;;  %v416_v21 = vld [vmem:[%s1126_s3 + $0x10] sm:$0xff]  ;;  %v379_v22 = vld [vmem:[%s1125_s2 + $0x8] sm:$0xff]  ;;  %s676_s8 = sshll.u32 %s300_s29, 3  ;;  %vm568_vm11 = vcmp.lt.s32.totalorder %v1054_v27, 32 }
  0x1b   : > { %s679_s23 = sshll.u32 %s309_s21, 3  ;;  %s306_s9 = scalar_lea.vmem %s1123_s0, %s677_s22  ;;  %705 = vmatpush.msra.mxu1 %v420_v7  ;;  %455 = vmatpush.msra.mxu0 %v420_v7  ;;  %v415_v23 = vld [vmem:[%s1126_s3 + $0x8] sm:$0xff]  ;;  %v378_v24 = vld [vmem:[%s1125_s2] sm:$0xff]  ;;  %v525_v47 = vld [vmem:[#allocation2 + $0x38] sm:$0xff] }
  0x1c   : > { %s996_s15 = scalar_lea.vmem %s1124_s1, %s679_s23  ;;  %v315_v2 = vld [vmem:[%s306_s9] sm:$0xff]  ;;  %706 = vmatpush.msra.mxu3 %v420_v7  ;;  %404 = vmatpush.msra.mxu2 %v383_v8  ;;  %v524_v48 = vld [vmem:[#allocation2 + $0x30] sm:$0xff]  ;;  %v523_v49 = vld [vmem:[#allocation2 + $0x28] sm:$0xff]  ;;  %s302_s28 = scalar_lea.vmem [#allocation5], %s676_s8 }
  0x1d   : > { %v324_v1 = vld [vmem:[%s996_s15 + $0x10] sm:$0xff]  ;;  %317 = vperm.xlu1 %774, %v315_v2   ;;  %v325_v3 = vld [vmem:[%s996_s15 + $0x18] sm:$0xff]  ;;  %v327_v10 = vld [vmem:[%s996_s15 + $0x28] sm:$0xff]  ;;  %707 = vmatpush.msra.mxu1 %v419_v9  ;;  %s584_s16 = sshll.u32 %s302_s28, 4  ;;  %s586_s17 = sshll.u32 %s582_s14, 4  ;;  %s585_s16 = int_to_ptr.vmem [resolvable:$true] %s584_s16  ;;  %s587_s17 = int_to_ptr.hbm [resolvable:$true] %s586_s17 }
  0x1e   : > { %337 = vperm.xlu0 %773, %v324_v1   ;;  %340 = vperm.xlu2 %775, %v325_v3   ;;  %v322_v11 = vld [vmem:[%s996_s15] sm:$0xff]  ;;  %v328_v12 = vld [vmem:[%s996_s15 + $0x30] sm:$0xff]  ;;  %v323_v13 = vld [vmem:[%s996_s15 + $0x8] sm:$0xff]  ;;  %s572_s18 = scalar_lea.sflag [#allocation4], %s300_s29  ;;  %s826_s20 = sshra.s32 %s587_s17, 4  ;;  %s827_s20 = int_to_ptr.hbm [resolvable:$true] %s826_s20 }
  0x1f   : > { %456 = vmatpush.msra.mxu0 %v419_v9  ;;  %708 = vmatpush.msra.mxu3 %v419_v9  ;;  %v326_v14 = vld [vmem:[%s996_s15 + $0x20] sm:$0xff]  ;;  %v329_v15 = vld [vmem:[%s996_s15 + $0x38] sm:$0xff]  ;;  %v520_v53 = vld [vmem:[#allocation2 + $0x10] sm:$0xff]  ;;  %s828_s19 = scalar_lea.hbm %s827_s20, 8  ;;  %s832_s15 = scalar_lea.hbm %s1130_s7, 16 }
  0x20   : > { %405 = vmatpush.msra.mxu2 %v382_v16  ;;  %709 = vmatpush.msra.mxu1 %v418_v17  ;;  %v414_v25 = vld [vmem:[%s1126_s3] sm:$0xff]  ;;  %v521_v51 = vld [vmem:[#allocation2 + $0x18] sm:$0xff]  ;;  %v519_v54 = vld [vmem:[#allocation2 + $0x8] sm:$0xff]  ;;  %p829_p1 = scmp.ne.s32.totalorder %s827_s20, %s828_s19  ;;  %p833_p4 = scmp.lt.s32.totalorder %s827_s20, %s1130_s7 }
  0x21   : > { %457 = vmatpush.msra.mxu0 %v418_v17  ;;  %710 = vmatpush.msra.mxu3 %v418_v17  ;;  %v522_v50 = vld [vmem:[#allocation2 + $0x20] sm:$0xff]  ;;  %p834_p7 = scmp.lt.s32.totalorder %s832_s15, %s828_s19 }
  0x22   : > { %406 = vmatpush.msra.mxu2 %v381_v18  ;;  %711 = vmatpush.msra.mxu1 %v417_v19  ;;  %v776_v55 = vld [vmem:[%s1127_s4] ss:$0 sm:$0xff]  ;;  %p830_p2 = pnand %p829_p1, %p963_p5 }
  0x23   : > { %458 = vmatpush.msra.mxu0 %v417_v19  ;;  %712 = vmatpush.msra.mxu3 %v417_v19  ;;  %v518_v56 = vld [vmem:[#allocation2] sm:$0xff]  ;;  %p835_p8 = por %p834_p7, %p833_p4 }
  0x24   : > { %407 = vmatpush.msra.mxu2 %v380_v20  ;;  %713 = vmatpush.msra.mxu1 %v416_v21  ;;  %p831_p3 = pneg %p830_p2 }
  0x25   : > { %331 = vperm.xlu1 %774, %v322_v11   ;;  %459 = vmatpush.msra.mxu0 %v416_v21 }
  0x26   : > { %346 = vperm.xlu0 %773, %v327_v10   ;;  %349 = vperm.xlu2 %775, %v328_v12   ;;  %p836_p9 = pnand %p835_p8, %p831_p3 }
  0x27   : > { %714 = vmatpush.msra.mxu3 %v416_v21  ;;  %408 = vmatpush.msra.mxu2 %v379_v22 }
  0x28   : > { %715 = vmatpush.msra.mxu1 %v415_v23  ;;  %460 = vmatpush.msra.mxu0 %v415_v23 }
  0x29   : > { %716 = vmatpush.msra.mxu3 %v415_v23  ;;  %409 = vmatpush.msra.mxu2 %v378_v24 }
  0x2a   : > { %717 = vmatpush.msra.mxu1 %v414_v25  ;;  %461 = vmatpush.msra.mxu0 %v414_v25 }
  0x2b   : > { %718 = vmatpush.msra.mxu3 %v414_v25  ;;  %541 = vmatpush.msrb.mxu2 %v525_v47 }
  0x2d   : > { %343 = vperm.xlu1 %774, %v326_v14   ;;  %542 = vmatpush.msrb.mxu2 %v524_v48 }
  0x2e   : > { %334 = vperm.xlu0 %773, %v323_v13   ;;  %352 = vperm.xlu2 %775, %v329_v15  }
  0x2f   : > { %543 = vmatpush.msrb.mxu2 %v523_v49 }
  0x31   : > { %544 = vmatpush.msrb.mxu2 %v522_v50 }
  0x33   : > { %545 = vmatpush.msrb.mxu2 %v521_v51 }
  0x35   : > { %546 = vmatpush.msrb.mxu2 %v520_v53 }
  0x37   : > { %547 = vmatpush.msrb.mxu2 %v519_v54 }
  0x39   : > { %548 = vmatpush.msrb.mxu2 %v518_v56 }
  0x78   : > { %v341_v30 = vpop.permute.xlu2 %340 }
  0x79   : > { %vm357_vm3 = vcmp.eq.s32.totalorder %v1054_v27, %v341_v30 }
  0x7a   : > { %v684_v34 = vsel %vm357_vm3, 1.0, %v884_v31 }
  0x80   : > { %v350_v39 = vpop.permute.xlu2 %349 }
  0x81   : > { %vm360_vm6 = vcmp.eq.s32.totalorder %v1054_v27, %v350_v39 }
  0x82   : > { %v687_v44 = vsel %vm360_vm6, 1.0, %v884_v31 }
  0x88   : > { %v353_v45 = vpop.permute.xlu2 %352 }
  0x89   : > { %vm361_vm9 = vcmp.eq.s32.totalorder %v1054_v27, %v353_v45 }
  0x8a   : > { %v688_v46 = vsel %vm361_vm9, 1.0, %v884_v31 }
  0x8f   : > { %v318_v29 = vpop.permute.xlu1 %317 }
  0x90   : > { %v338_v28 = vpop.permute.xlu0 %337  ;;  %vm319_vm2 = vcmp.eq.s32.totalorder %v1054_v27, %v318_v29 }
  0x91   : > { %vm356_vm1 = vcmp.eq.s32.totalorder %v1054_v27, %v338_v28  ;;  %v680_v33 = vsel %vm319_vm2, 1.0, %v884_v31 }
  0x92   : > { %v683_v32 = vsel %vm356_vm1, 1.0, %v884_v31  ;;  %689 = vmatmul.msk.f32.vlgmr.msra.gmra.mxu2 %vm390_vm0, %v680_v33 }
  0x93   : > { %692 = vmatmul.msk.f32.vlgmr.msra.gmra.mxu1 %vm390_vm0, %v683_v32 }
  0x97   : > { %v332_v36 = vpop.permute.xlu1 %331 }
  0x98   : > { %v347_v35 = vpop.permute.xlu0 %346  ;;  %vm354_vm5 = vcmp.eq.s32.totalorder %v1054_v27, %v332_v36 }
  0x99   : > { %vm359_vm4 = vcmp.eq.s32.totalorder %v1054_v27, %v347_v35  ;;  %v681_v38 = vsel %vm354_vm5, 1.0, %v884_v31 }
  0x9a   : > { %v686_v37 = vsel %vm359_vm4, 1.0, %v884_v31  ;;  %690 = vmatmul.msk.f32.vlgmr.msra.gmra.mxu0 %vm390_vm0, %v681_v38 }
  0x9b   : > { %693 = vmatmul.msk.f32.gmra.mxu1 %vm390_vm0, %v684_v34  ;;  %695 = vmatmul.msk.f32.vlgmr.msra.gmra.mxu3 %vm390_vm0, %v686_v37  ;;  %v777_v34 = vld [vmem:[%s1129_s6] ss:$0 sm:$0xff] }
  0x9f   : > { %v344_v41 = vpop.permute.xlu1 %343 }
  0xa0   : > { %v335_v40 = vpop.permute.xlu0 %334  ;;  %vm358_vm8 = vcmp.eq.s32.totalorder %v1054_v27, %v344_v41 }
  0xa1   : > { %vm355_vm7 = vcmp.eq.s32.totalorder %v1054_v27, %v335_v40  ;;  %v685_v43 = vsel %vm358_vm8, 1.0, %v884_v31 }
  0xa2   : > { %v682_v42 = vsel %vm355_vm7, 1.0, %v884_v31 }
  0xa3   : > { %691 = vmatmul.msk.f32.gmra.mxu0 %vm390_vm0, %v682_v42  ;;  %694 = vmatmul.msk.f32.gmra.mxu1 %vm390_vm0, %v685_v43 }
  0xa4   : > { %696 = vmatmul.msk.f32.gmra.mxu3 %vm390_vm0, %v687_v44 }
  0xac   : > { %697 = vmatmul.msk.f32.gmra.mxu3 %vm390_vm0, %v688_v46 }
 0x110   : > { %v469_v52 = vpop.f32.mrf.mxu1 }
 0x115   : > { %v411_v57 = vpop.f32.mrf.mxu2 }
 0x116   : > { %v412_v60 = vadd.f32 %v776_v55, %v411_v57 }
 0x117   : > { %v463_v58 = vpop.f32.mrf.mxu0 }
 0x118   : > { %v472_v59 = vpop.f32.mrf.mxu1  ;;  %v487_v61 = vadd.f32 %v463_v58, %v412_v60  ;;  %v489_v63 = vadd.f32 %v469_v52, %v412_v60 }
 0x119   : > { %v490_v3 = vadd.f32 %v472_v59, %v412_v60 }
 0x11a   : > { %v495_v2 = vmax.f32 %v487_v61, 0.0  ;;  %v497_v6 = vmax.f32 %v489_v63, 0.0 }
 0x11b   : > { %v498_v9 = vmax.f32 %v490_v3, 0.0 }
 0x11c   : > { %v503_v8 = vsel %vm390_vm0, %v495_v2, 0.0  ;;  %v506_v13 = vsel %vm390_vm0, %v497_v6, 0.0 }
 0x11d   : > { %v508_v17 = vsel %vm390_vm0, %v498_v9, 0.0 }
 0x11e   : > { %v478_v62 = vpop.f32.mrf.mxu3 }
 0x11f   : > { %v492_v11 = vadd.f32 %v478_v62, %v412_v60 }
 0x120   : > { %v466_v0 = vpop.f32.mrf.mxu0  ;;  %v475_v1 = vpop.f32.mrf.mxu1 }
 0x121   : > { %v488_v4 = vadd.f32 %v466_v0, %v412_v60  ;;  %v491_v7 = vadd.f32 %v475_v1, %v412_v60  ;;  %v500_v18 = vmax.f32 %v492_v11, 0.0 }
 0x123   : > { %v496_v5 = vmax.f32 %v488_v4, 0.0  ;;  %v499_v14 = vmax.f32 %v491_v7, 0.0  ;;  %v512_v23 = vsel %vm390_vm0, %v500_v18, 0.0 }
 0x125   : > { %v504_v10 = vsel %vm390_vm0, %v496_v5, 0.0  ;;  %v510_v21 = vsel %vm390_vm0, %v499_v14, 0.0 }
 0x126   : > { %v505_v12 = vadd.f32 %v504_v10, %v503_v8 }
 0x127   : > { %v481_v15 = vpop.f32.mrf.mxu3 }
 0x128   : > { %v507_v16 = vadd.f32 %v506_v13, %v505_v12  ;;  %v493_v20 = vadd.f32 %v481_v15, %v412_v60 }
 0x12a   : > { %v509_v19 = vadd.f32 %v508_v17, %v507_v16  ;;  %v501_v24 = vmax.f32 %v493_v20, 0.0 }
 0x12c   : > { %v511_v22 = vadd.f32 %v510_v21, %v509_v19  ;;  %v514_v29 = vsel %vm390_vm0, %v501_v24, 0.0 }
 0x12e   : > { %v513_v25 = vadd.f32 %v512_v23, %v511_v22 }
 0x12f   : > { %v484_v26 = vpop.f32.mrf.mxu3 }
 0x130   : > { %v494_v28 = vadd.f32 %v484_v26, %v412_v60  ;;  %v515_v31 = vadd.f32 %v514_v29, %v513_v25 }
 0x132   : > { %v502_v30 = vmax.f32 %v494_v28, 0.0 }
 0x134   : > { %v516_v32 = vsel %vm390_vm0, %v502_v30, 0.0 }
 0x135   : > { %v517_v33 = vadd.f32 %v516_v32, %v515_v31 }
 0x137   : > { %698 = vmatmul.msk.f32.vlgmr.msrb.gmra.mxu2 %vm390_vm0, %v517_v33 }
 0x1ba   : > { %v550_v35 = vpop.f32.mrf.mxu2 }
 0x1bb   : > { %v551_v36 = vadd.f32 %v777_v34, %v550_v35 }
 0x1bd   : > { %v554_v37 = vand.u32 2147483647, %v551_v36  ;;  %v553_v48 = vmax.f32 %v551_v36, 0.0 }
 0x1bf   : > { %v555_v38 = vsub.f32 0.0, %v554_v37 }
 0x1c1   : > { %v556_v39 = vmul.f32 1.442695, %v555_v38 }
 0x1c3   : > { %778 = vpow2.f32 %v556_v39 }
 0x1c9   : > { %v779_v40 = vpop.eup %778 }
 0x1ca   : > { %v558_v41 = vadd.f32 1.0, %v779_v40  ;;  %v561_v42 = vmul.f32 -0.5, %v779_v40  ;;  %v564_v44 = vand.u32 2147483647, %v779_v40 }
 0x1cc   : > { %780 = vlog2.f32 %v558_v41  ;;  %v562_v43 = vadd.f32 1.0, %v561_v42  ;;  %vm565_vm10 = vcmp.lt.f32.partialorder %v564_v44, 0.0004427343 }
 0x1ce   : > { %v563_v47 = vmul.f32 %v779_v40, %v562_v43 }
 0x1d2   : > { %v781_v45 = vpop.eup %780 }
 0x1d3   : > { %v560_v46 = vmul.f32 0.6931472, %v781_v45 }
 0x1d5   : > { %v566_v49 = vsel %vm565_vm10, %v563_v47, %v560_v46 }
 0x1d6   : > { %v567_v50 = vadd.f32 %v566_v49, %v553_v48 }
 0x1d8   : > { %v569_v51 = vsel %vm568_vm11, %v551_v36, %v567_v50 }
 0x1d9   : > { %570 = vst.msk [vmem:[%s302_s28] sm:$0xff] %vm390_vm0, %v569_v51 }
 0x1da   : > { %839 = shalt.err (!%p836_p9)
}
 0x1db   : > { %723 = dma.vmem_to_hbm [thread:$0]  (%p963_p5), %s585_s16, 128, %s587_s17, %s572_s18  }
 0x1dc PF: > { %p735_p10 = scmp.ge.s32.totalorder %s878_s27, 2  ;;  %s598_s29 = sand.u32 1, %s866_s24  }
 0x1dd   : > { %s599_s9 = scalar_lea.sflag [#allocation4], %s598_s29 }
 0x1de   : > { %p730_p11 = pnand %p735_p10, %p967_p6 }
 0x1e0   : > { %p731_p12 = pneg %p730_p11 }
 0x1e2   : > { %861 = dma.done.wait (%p731_p12), %s599_s9, 128  }
 0x1e3   : > { %863 = vsyncadd (%p731_p12), %s599_s9, 4294967168  ;;  %p18_p13 = scmp.ge.s32.totalorder %s950_s30, 4   ;;  %s1133_s24 = smov %s870_s25 }
 0x1e4   : > { %s1134_s25 = smov %s874_s26  ;;  %s1135_s26 = smov %s961_s10 }
 0x1e5   : > { %s1136_s27 = smov %s950_s30  ;;  %20 = sbr.rel (!%p18_p13) target bundleno = 4 (0x4), region = 91 }
 0x1ea   :  { %605 = vsyncpa [#allocation3], 1 }
 0x1eb   :  { %607 = vsyncpa [#allocation3 + $0x1], 1 }
 0x1ec   :  { %608 = vsyncpa [#allocation4], 1 }
 0x1ed   :  { %610 = vsyncpa [#allocation4 + $0x1], 1 }

</bundles_post_ra>
